<compile_context>
chip_gen: v7x
topology: tpu7x:2x2x1
jax: 0.10.0
libtpu: 0.0.40
codegen_flags: <defaults>
</compile_context>

<pallas_src>
import math

import jax
import jax.numpy as jnp
import numpy as np
from jax.experimental import pallas as pl
from jax.experimental.pallas import tpu as pltpu

# --- IntGELU constants (from the module __init__) ---
_K = 1.4142
_CONST = 14
_COEFF0 = -0.2888
_COEFF1 = -1.769
_COEFF2 = 1.0 / _COEFF0   # coeff[2] /= coeff[0]


def _int_gelu_kernel(params_ref, x_ref, o_ref):
    """Elementwise integer-GELU hot path.

    params_ref: (5,) float32 in SMEM:
        [sf, b_int, c_int, shift_int, out_scale]  (all precomputed scalars)
    x_ref / o_ref: (tm, width) VMEM tiles (input dtype; compute in f32).
    """
    sf = params_ref[0]
    b_int = params_ref[1]
    c_int = params_ref[2]
    shift_int = params_ref[3]
    out_scale = params_ref[4]   # = sf * sig_sf / 2  (fused output multiplier)

    # Keep the real divide for floor-parity with the PyTorch reference:
    # a 1-ulp drift from mul-by-reciprocal could flip the floor below.
    x_int = x_ref[...].astype(jnp.float32) / sf

    # int_erf polynomial (per-element part only; scalars hoisted to wrapper).
    abs_int = jnp.minimum(jnp.abs(x_int), -b_int)
    t = abs_int + b_int
    poly = t * t + c_int
    # sign(0)==0 doesn't matter: output is multiplied by x_int (== 0 there).
    y_int = jnp.where(x_int < 0.0, -poly, poly)
    y_int = jnp.floor(y_int * (2.0 ** -_CONST))   # exact power-of-two scale

    o_ref[...] = (x_int * (y_int + shift_int) * out_scale).astype(o_ref.dtype)


def _choose_layout(total):
    """Pick a free, lane-dense 2-D view (rows, width) of the flat tensor.

    Returns (needs_pad, rows, width).  width is always a multiple of 128; when
    total % 128 == 0 the reshape is free (no pad, no tail slice).
    """
    if total % 128 == 0:
        g = math.gcd(total // 128, 8)
        width = 128 * g
        rows = total // width
        # Prefer more rows (more grid steps) for small tensors.
        while width > 128 and rows < 64:
            width //= 2
            rows *= 2
        return False, rows, width
    # Fallback: tiny pad up to the next multiple of 128 lanes.
    width = 128
    rows = -(-total // width)
    return True, rows, width


def _choose_tm(rows, width, itemsize):
    """Row-tile size: ~2 MiB blocks, but keep >= ~8 grid steps when possible."""
    if rows <= 8:
        return rows                      # block == full row dim (allowed)
    target_block_bytes = 2 * 1024 * 1024
    tm_vmem = max(8, (target_block_bytes // (width * itemsize)) // 8 * 8)
    tm_steps = max(8, ((-(-rows // 8)) // 8) * 8)   # ~>= 8 grid steps
    return min(tm_vmem, tm_steps)


@jax.jit
def int_gelu(x, scaling_factor):
    """Pallas IntGELU. x: float tensor (any shape); scaling_factor: scalar.

    Returns (out, out_scaling_factor) matching the PyTorch module.
    """
    orig_shape = x.shape
    total = math.prod(orig_shape)

    # ---- scalar-only math, computed once per call (hoisted out of kernel) --
    sf = jnp.asarray(scaling_factor, jnp.float32)
    sf_erf = sf / _K
    b_int = jnp.floor(_COEFF1 / sf_erf)
    c_int = jnp.floor(_COEFF2 / (sf_erf * sf_erf))
    sig_sf = (sf_erf * sf_erf) * _COEFF0
    sig_sf = sig_sf * (2.0 ** _CONST)
    shift_int = jnp.floor(1.0 / sig_sf)          # 1.0 // sigmoid_scaling_factor
    out_sf = sf * sig_sf / 2.0
    params = jnp.stack([sf, b_int, c_int, shift_int, out_sf]).astype(jnp.float32)

    # ---- lane-dense slab; free reshape on the fast path ---------------------
    needs_pad, rows, width = _choose_layout(total)
    itemsize = jnp.dtype(x.dtype).itemsize
    tm = _choose_tm(rows, width, max(itemsize, 4))
    grid_n = -(-rows // tm)                      # partial final block is fine

    x_flat = x.reshape(-1)
    if needs_pad:
        x_flat = jnp.pad(x_flat, (0, rows * width - total))
    x2 = x_flat.reshape(rows, width)

    out2 = pl.pallas_call(
        _int_gelu_kernel,
        out_shape=jax.ShapeDtypeStruct((rows, width), x.dtype),
        grid=(grid_n,),
        in_specs=[
            pl.BlockSpec(memory_space=pltpu.MemorySpace.SMEM),   # scalars
            pl.BlockSpec((tm, width), lambda i: (i, 0)),         # x tile
        ],
        out_specs=pl.BlockSpec((tm, width), lambda i: (i, 0)),
        compiler_params=pltpu.CompilerParams(
            dimension_semantics=("parallel",)),
    )(params, x2)

    if needs_pad:
        out = out2.reshape(-1)[:total].reshape(orig_shape)
    else:
        out = out2.reshape(orig_shape)
    return out, out_sf


def _int_gelu_ref(x, sf):
    """Pure-numpy reference mirroring the PyTorch forward (quant_mode=True)."""
    x = np.asarray(x, np.float32)
    sf = np.float32(sf)
    x_int = x / sf
    sf_erf = sf / np.float32(_K)
    b_int = np.floor(_COEFF1 / sf_erf)
    c_int = np.floor(_COEFF2 / sf_erf ** 2)
    sign = np.sign(x_int)
    abs_int = np.minimum(np.abs(x_int), -b_int)
    y_int = sign * ((abs_int + b_int) ** 2 + c_int)
    sig_sf = sf_erf ** 2 * np.float32(_COEFF0)
    y_int = np.floor(y_int / 2 ** _CONST)
    sig_sf = sig_sf * 2 ** _CONST
    shift_int = np.floor(1.0 / sig_sf)
    x_int = x_int * (y_int + shift_int)
    out_sf = sf * sig_sf / 2
    return x_int * out_sf, out_sf


if __name__ == "__main__":
    scaling_factor = jnp.float32(0.05)

    # Small NCHW activation (fast path: total % 128 == 0, no pad / no slice).
    x = jax.random.normal(jax.random.PRNGKey(0), (2, 4, 16, 16), dtype=jnp.float32)
    out, out_sf = int_gelu(x, scaling_factor)
    out = jax.block_until_ready(out)
    out_sf = jax.block_until_ready(out_sf)
    ref_out, ref_sf = _int_gelu_ref(np.asarray(x), float(scaling_factor))
    np.testing.assert_allclose(np.asarray(out), ref_out, rtol=1e-5, atol=1e-5)
    np.testing.assert_allclose(float(out_sf), ref_sf, rtol=1e-6)

    # Partial-final-block path (rows not a multiple of tm, no row padding).
    x2 = jax.random.normal(jax.random.PRNGKey(1), (2, 9, 128), dtype=jnp.float32)
    out2, _ = int_gelu(x2, scaling_factor)
    ref2, _ = _int_gelu_ref(np.asarray(x2), float(scaling_factor))
    np.testing.assert_allclose(np.asarray(jax.block_until_ready(out2)), ref2,
                               rtol=1e-5, atol=1e-5)

    # Padded fallback (total not a multiple of 128).
    x3 = jax.random.normal(jax.random.PRNGKey(2), (3, 5, 7), dtype=jnp.float32)
    out3, _ = int_gelu(x3, scaling_factor)
    ref3, _ = _int_gelu_ref(np.asarray(x3), float(scaling_factor))
    np.testing.assert_allclose(np.asarray(jax.block_until_ready(out3)), ref3,
                               rtol=1e-5, atol=1e-5)

    print("KERNEL_OK")
</pallas_src>

<mosaic_0001>
module attributes {stable_mosaic.version = 11 : i64} {
  func.func @_int_gelu_kernel(%arg0: i32, %arg1: memref<5xf32, #tpu.memory_space<smem>>, %arg2: memref<8x128xf32, #tpu.memory_space<vmem>>, %arg3: memref<8x128xf32, #tpu.memory_space<vmem>>) attributes {dimension_semantics = [#tpu.dimension_semantics<parallel>], iteration_bounds = array<i64: 2>, scalar_prefetch = 0 : i64, scratch_operands = 0 : i64, tpu.core_type = #tpu.core_type<tc>, window_params = [{transform_indices = @transform_0, window_bounds = array<i64: 5>}, {transform_indices = @transform_1, window_bounds = array<i64: 8, 128>}, {transform_indices = @transform_2, window_bounds = array<i64: 8, 128>}]} {
    %c0 = arith.constant 0 : index
    %0 = memref.load %arg1[%c0] : memref<5xf32, #tpu.memory_space<smem>>
    %c1 = arith.constant 1 : index
    %1 = memref.load %arg1[%c1] : memref<5xf32, #tpu.memory_space<smem>>
    %c2 = arith.constant 2 : index
    %2 = memref.load %arg1[%c2] : memref<5xf32, #tpu.memory_space<smem>>
    %c3 = arith.constant 3 : index
    %3 = memref.load %arg1[%c3] : memref<5xf32, #tpu.memory_space<smem>>
    %c4 = arith.constant 4 : index
    %4 = memref.load %arg1[%c4] : memref<5xf32, #tpu.memory_space<smem>>
    %c0_0 = arith.constant 0 : index
    %c0_1 = arith.constant 0 : index
    %5 = vector.load %arg2[%c0_0, %c0_1] : memref<8x128xf32, #tpu.memory_space<vmem>>, vector<8x128xf32>
    %6 = vector.broadcast %0 : f32 to vector<8x128xf32>
    %7 = arith.divf %5, %6 : vector<8x128xf32>
    %8 = math.absf %7 : vector<8x128xf32>
    %cst = arith.constant 0.000000e+00 : f32
    %9 = arith.subf %cst, %1 : f32
    %10 = vector.broadcast %9 : f32 to vector<8x128xf32>
    %11 = arith.minimumf %8, %10 : vector<8x128xf32>
    %12 = vector.broadcast %1 : f32 to vector<8x128xf32>
    %13 = arith.addf %11, %12 : vector<8x128xf32>
    %14 = arith.mulf %13, %13 : vector<8x128xf32>
    %15 = vector.broadcast %2 : f32 to vector<8x128xf32>
    %16 = arith.addf %14, %15 : vector<8x128xf32>
    %cst_2 = arith.constant 0.000000e+00 : f32
    %17 = vector.broadcast %cst_2 : f32 to vector<8x128xf32>
    %18 = arith.cmpf olt, %7, %17 : vector<8x128xf32>
    %cst_3 = arith.constant 0.000000e+00 : f32
    %19 = vector.broadcast %cst_3 : f32 to vector<8x128xf32>
    %20 = arith.subf %19, %16 : vector<8x128xf32>
    %21 = arith.select %18, %20, %16 : vector<8x128xi1>, vector<8x128xf32>
    %cst_4 = arith.constant 6.10351563E-5 : f32
    %22 = vector.broadcast %cst_4 : f32 to vector<8x128xf32>
    %23 = arith.mulf %21, %22 : vector<8x128xf32>
    %24 = math.floor %23 : vector<8x128xf32>
    %25 = vector.broadcast %3 : f32 to vector<8x128xf32>
    %26 = arith.addf %24, %25 : vector<8x128xf32>
    %27 = arith.mulf %7, %26 : vector<8x128xf32>
    %28 = vector.broadcast %4 : f32 to vector<8x128xf32>
    %29 = arith.mulf %27, %28 : vector<8x128xf32>
    %c0_5 = arith.constant 0 : index
    %c0_6 = arith.constant 0 : index
    %30 = vector.load %arg3[%c0_5, %c0_6] : memref<8x128xf32, #tpu.memory_space<vmem>>, vector<8x128xf32>
    tpu.vector_store %arg3[%c0_5, %c0_6], %29 {strides = array<i32>} : memref<8x128xf32, #tpu.memory_space<vmem>>, vector<8x128xf32>,
    return
  }
  func.func @transform_0(%arg0: i32) -> i32 {
    %c0_i32 = arith.constant 0 : i32
    %c0_i32_0 = arith.constant 0 : i32
    return %c0_i32 : i32
  }
  func.func @transform_1(%arg0: i32) -> (i32, i32) {
    %c0_i32 = arith.constant 0 : i32
    %c0_i32_0 = arith.constant 0 : i32
    return %arg0, %c0_i32 : i32, i32
  }
  func.func @transform_2(%arg0: i32) -> (i32, i32) {
    %c0_i32 = arith.constant 0 : i32
    %c0_i32_0 = arith.constant 0 : i32
    return %arg0, %c0_i32 : i32, i32
  }
}

</mosaic_0001>

<bundles_post_ra>
// kernel: int_gelu.1
= control target key start
LH: loop header
LB: loop body
LE: loop exit
PB: predicated region body
PF: predicated region fallthrough
CT: control target
= control target key end

     0   :  { %7 = vsyncpa [#allocation3], 0  ;;  %s326_s9 = smov 0   ;;  %s360_s0 = inlined_call_operand.vmem [shape: f32[5], index: 0, kind: input, shape index: {}]   ;;  %s361_s1 = inlined_call_operand.vmem [shape: f32[16,128], index: 1, kind: input, shape index: {}]   ;;  %s362_s2 = inlined_call_operand.vmem [shape: f32[16,128], index: 2, kind: output, shape index: {}]  }
   0x1 LB: > { %s247_s10 = sadd.s32 4294967295, %s308_s9   ;;  %p249_p0 = scmp.ge.s32.totalorder %s308_s9, 1  ;;  %s308_s9 = sphi %s326_s9, %s13_s9  }
   0x2   : > { %p91_p1 = scmp.lt.s32.totalorder %s308_s9, 3  ;;  %s104_s13 = sshll.u32 %s360_s0, 4  ;;  %s105_s13 = int_to_ptr.vmem [resolvable:$true] %s104_s13 }
   0x3   : > { %p270_p3 = scmp.eq.s32.totalorder %s247_s10, 0  ;;  %s283_s15 = scalar_lea.vmem %s105_s13, 16 }
   0x4   : > { %p337_p2 = pnand %p249_p0, %p91_p1  ;;  %p284_p6 = scmp.ne.s32.totalorder %s105_s13, %s283_s15 }
   0x5   : > { %p291_p10 = scmp.lt.s32.totalorder %s105_s13, %s105_s13  ;;  %p292_p11 = scmp.lt.s32.totalorder %s283_s15, %s283_s15 }
   0x6   : > { %p266_p4 = pneg %p337_p2 }
   0x7   : > { %p293_p12 = por %p292_p11, %p291_p10 }
   0x8   : > { %p267_p5 = pnand %p270_p3, %p266_p4 }
   0xa   : > { %p285_p7 = pneg %p267_p5 }
   0xc   : > { %p286_p8 = pnand %p285_p7, %p284_p6 }
   0xe   : > { %p287_p9 = pneg %p286_p8 }
  0x10   : > { %p294_p13 = pnand %p293_p12, %p287_p9 }
  0x12   : > { %297 = shalt.err (!%p294_p13)
}
  0x13   : > { %s310_s16 = smov [#allocation2]   ;;  %124 = sbr.rel (%p337_p2) target bundleno = 73 (0x49), region = 28 }
  0x14   : > { %269 = dma.vmem_to_smem (!%p267_p5), %s105_s13, 16, %s310_s16, [#allocation3]  }
  0x1a   : > { %303 = dma.done.wait (%p270_p3), [#allocation3], 16  }
  0x1b   : > { %305 = vsyncadd (%p270_p3), [#allocation3], 4294967280 }
  0x1c   : > { %130 = sfence }
  0x1d   : > { %s153_s17 = sld [smem:[#allocation2]]  ;;  %p145_p0 = scmp.lt.s32.totalorder %s247_s10, 1 }
  0x1e   : > { %s256_s18 = sld [smem:[#allocation2 + $0x1]]  ;;  %s257_s24 = sld [smem:[#allocation2 + $0x2]] }
  0x1f   : > { %s365_s10 = smov (!%p145_p0, %s247_s10), 1  ;;  %s258_s25 = sld [smem:[#allocation2 + $0x3]] }
  0x20   : > { %s254_s19 = sshll.u32 %s365_s10, 3  ;;  %s259_s26 = sld [smem:[#allocation2 + $0x4]] }
  0x21   : > { %s148_s22 = scalar_lea.vmem %s361_s1, %s254_s19  ;;  %s152_s29 = scalar_lea.vmem %s362_s2, %s254_s19 }
  0x22   : > { %v158_v1 = vld [vmem:[%s148_s22] sm:$0xff] }
  0x23   : > { %v159_v0 = vstv %s153_s17 }
  0x24   : > { %281 = vrcp.f32 %v159_v0  ;;  %s163_s23 = ssub.f32 0.0, %s256_s18  ;;  %v166_v6 = vstv %s256_s18  ;;  %v169_v9 = vstv %s257_s24 }
  0x25   : > { %v176_v15 = vstv %s258_s25 }
  0x26   : > { %v164_v4 = vstv %s163_s23  ;;  %v179_v18 = vstv %s259_s26 }
  0x2e   : > { %v282_v2 = vpop.eup %281 }
  0x2f   : > { %v161_v3 = vmul.f32 %v282_v2, %v158_v1 }
  0x31   : > { %v162_v5 = vand.u32 2147483647, %v161_v3  ;;  %vm171_vm0 = vcmp.lt.f32.partialorder %v161_v3, 0.0 }
  0x33   : > { %v165_v7 = vmin.f32 %v162_v5, %v164_v4 }
  0x35   : > { %v167_v8 = vadd.f32 %v166_v6, %v165_v7 }
  0x37   : > { %v168_v10 = vmul.f32 %v167_v8, %v167_v8 }
  0x39   : > { %v170_v11 = vadd.f32 %v169_v9, %v168_v10 }
  0x3b   : > { %v172_v12 = vsub.f32 0.0, %v170_v11 }
  0x3d   : > { %v173_v13 = vsel %vm171_vm0, %v172_v12, %v170_v11 }
  0x3e   : > { %v174_v14 = vmul.f32 6.1035156e-05, %v173_v13 }
  0x40   : > { %v175_v16 = vfloor.f32 %v174_v14 }
  0x42   : > { %v177_v17 = vadd.f32 %v176_v15, %v175_v16 }
  0x44   : > { %v178_v19 = vmul.f32 %v177_v17, %v161_v3 }
  0x46   : > { %v180_v20 = vmul.f32 %v179_v18, %v178_v19 }
  0x48   : > { %181 = vst [vmem:[%s152_s29] sm:$0xff] %v180_v20 }
  0x49 PF: > { %s13_s9 = sadd.s32 1, %s308_s9  }
  0x4a   : > { %p10_p1 = scmp.ge.s32.totalorder %s13_s9, 4  }
  0x4c   :  { %12 = sbr.rel (!%p10_p1) target bundleno = 1 (0x1), region = 63 }
  0x53   :  { %201 = vsyncpa [#allocation3], 1 }
  0x54   :  { %203 = vsyncpa [#allocation3 + $0x1], 1 }

</bundles_post_ra>
